<compile_context>
chip_gen: v6e
topology: v6e:2x2x1
jax: 0.10.0
libtpu: 0.0.40
codegen_flags: <defaults>
</compile_context>

<pallas_src>
import functools

import jax
import jax.numpy as jnp
from jax.experimental import pallas as pl
from jax.experimental.pallas import tpu as pltpu

LANE = 128


def _round_up(x, m):
    return ((x + m - 1) // m) * m


def actor_kernel(x_ref, w1_ref, b1_ref, w2_ref, b2_ref, w3_ref, b3_ref,
                 w4_ref, b4_ref, o_ref):
    """One batch tile: 4 fused matmuls (bf16 MXU inputs, f32 accumulation) + ReLU/ReLU/ReLU/Tanh."""
    wd = w1_ref.dtype
    x = x_ref[...].astype(wd)                                   # f32 -> bf16 under the input DMA
    h = jnp.dot(x, w1_ref[...], preferred_element_type=jnp.float32) + b1_ref[...]
    h = jnp.maximum(h, 0.0)
    h = jnp.dot(h.astype(wd), w2_ref[...], preferred_element_type=jnp.float32) + b2_ref[...]
    h = jnp.maximum(h, 0.0)
    h = jnp.dot(h.astype(wd), w3_ref[...], preferred_element_type=jnp.float32) + b3_ref[...]
    h = jnp.maximum(h, 0.0)
    h = jnp.dot(h.astype(wd), w4_ref[...], preferred_element_type=jnp.float32) + b4_ref[...]
    o_ref[...] = jnp.tanh(h).astype(o_ref.dtype)


@functools.partial(jax.jit, static_argnames=("tile_b",))
def actor_forward(state, params, *, tile_b=2048):
    """state: (B, observation_size) f32. params: dict of (in, out) bf16 weights + (1, out) f32 biases."""
    w1, b1, w2, b2, w3, b3, w4, b4 = (
        params["w1"], params["b1"], params["w2"], params["b2"],
        params["w3"], params["b3"], params["w4"], params["b4"],
    )
    B, obs = state.shape
    num_actions = w4.shape[1]

    # Zero-pad hidden widths up to 128 lanes (ReLU(0)=0 -> exact) so every intermediate
    # activation is lane-dense. Weight padding is tiny and VMEM-pinned.
    h1, h2, h3 = w1.shape[1], w2.shape[1], w3.shape[1]
    h1p, h2p, h3p = (_round_up(d, LANE) for d in (h1, h2, h3))
    w1p = jnp.pad(w1, ((0, 0), (0, h1p - h1)))
    b1p = jnp.pad(b1, ((0, 0), (0, h1p - h1)))
    w2p = jnp.pad(w2, ((0, h1p - h1), (0, h2p - h2)))
    b2p = jnp.pad(b2, ((0, 0), (0, h2p - h2)))
    w3p = jnp.pad(w3, ((0, h2p - h2), (0, h3p - h3)))
    b3p = jnp.pad(b3, ((0, 0), (0, h3p - h3)))
    w4p = jnp.pad(w4, ((0, h3p - h3), (0, 0)))

    # Batch tiling: sublane-aligned (8 is enough for the f32 streamed state); keep at
    # least two tiles for moderate/large B so megacore (v7x) has work on both cores.
    tb = min(_round_up(tile_b, 8), _round_up(B, 8))
    if B > 512:
        tb = min(tb, _round_up(pl.cdiv(B, 2), 256))
    grid = (pl.cdiv(B, tb),)                                    # ragged last tile OK

    pinned = lambda a: pl.BlockSpec(a.shape, lambda i: (0, 0))  # constant index -> VMEM-resident

    out = pl.pallas_call(
        actor_kernel,
        out_shape=jax.ShapeDtypeStruct((B, num_actions), jnp.float32),
        grid=grid,
        in_specs=[
            pl.BlockSpec((tb, obs), lambda i: (i, 0)),          # streamed per batch tile (f32)
            pinned(w1p), pinned(b1p),
            pinned(w2p), pinned(b2p),
            pinned(w3p), pinned(b3p),
            pinned(w4p), pinned(b4),
        ],
        out_specs=pl.BlockSpec((tb, num_actions), lambda i: (i, 0)),  # narrow, row-major-contiguous
        compiler_params=pltpu.CompilerParams(
            dimension_semantics=("parallel",),                  # megacore-shard batch tiles on v7x
        ),
    )(state, w1p, b1p, w2p, b2p, w3p, b3p, w4p, b4)

    return out


def init_actor_params(key, observation_size, num_actions, weight_dtype=jnp.bfloat16):
    """nn.Linear-style init U(-1/sqrt(fan_in), 1/sqrt(fan_in)).
    Weights stored (in, out) in bf16 (MXU-native, half the VMEM/HBM traffic);
    biases stay f32 since they are added to the f32 accumulator."""
    hidden = [128, 64, 32]
    dims = [observation_size] + hidden + [num_actions]
    params = {}
    for i in range(4):
        fan_in, fan_out = dims[i], dims[i + 1]
        key, kw, kb = jax.random.split(key, 3)
        bound = 1.0 / (fan_in ** 0.5)
        params[f"w{i+1}"] = jax.random.uniform(
            kw, (fan_in, fan_out), jnp.float32, minval=-bound, maxval=bound
        ).astype(weight_dtype)
        params[f"b{i+1}"] = jax.random.uniform(
            kb, (1, fan_out), jnp.float32, minval=-bound, maxval=bound)
    return params


if __name__ == "__main__":
    key = jax.random.PRNGKey(0)
    observation_size = 32
    num_actions = 4
    batch = 20              # deliberately not a multiple of the tile -> exercises the ragged last tile

    key, k_state = jax.random.split(key)
    state = jax.random.normal(k_state, (batch, observation_size), jnp.float32)
    params = init_actor_params(key, observation_size, num_actions)

    # small tile_b here so the demo actually runs a multi-step pipelined grid (tiles of 8, last ragged)
    out = jax.block_until_ready(actor_forward(state, params, tile_b=8))

    # Pure-JAX reference with the same bf16-weights / f32-accumulation recipe.
    def ref(x, p):
        bf = p["w1"].dtype
        h = jnp.dot(x.astype(bf), p["w1"], preferred_element_type=jnp.float32) + p["b1"]
        h = jax.nn.relu(h)
        h = jnp.dot(h.astype(bf), p["w2"], preferred_element_type=jnp.float32) + p["b2"]
        h = jax.nn.relu(h)
        h = jnp.dot(h.astype(bf), p["w3"], preferred_element_type=jnp.float32) + p["b3"]
        h = jax.nn.relu(h)
        h = jnp.dot(h.astype(bf), p["w4"], preferred_element_type=jnp.float32) + p["b4"]
        return jnp.tanh(h)

    expected = ref(state, params)
    assert out.shape == (batch, num_actions)
    assert jnp.allclose(out, expected, atol=1e-2, rtol=1e-2), \
        float(jnp.max(jnp.abs(out - expected)))

    # also sanity-check the default large-tile (single ragged tile) path
    out2 = jax.block_until_ready(actor_forward(state, params))
    assert out2.shape == (batch, num_actions)
    assert jnp.allclose(out2, expected, atol=1e-2, rtol=1e-2)

    print("KERNEL_OK")
</pallas_src>

<mosaic_0001>
module attributes {stable_mosaic.version = 11 : i64} {
  func.func @actor_kernel(%arg0: i32, %arg1: memref<8x32xf32, #tpu.memory_space<vmem>>, %arg2: memref<32x128xbf16, #tpu.memory_space<vmem>>, %arg3: memref<1x128xf32, #tpu.memory_space<vmem>>, %arg4: memref<128x128xbf16, #tpu.memory_space<vmem>>, %arg5: memref<1x128xf32, #tpu.memory_space<vmem>>, %arg6: memref<128x128xbf16, #tpu.memory_space<vmem>>, %arg7: memref<1x128xf32, #tpu.memory_space<vmem>>, %arg8: memref<128x4xbf16, #tpu.memory_space<vmem>>, %arg9: memref<1x4xf32, #tpu.memory_space<vmem>>, %arg10: memref<8x4xf32, #tpu.memory_space<vmem>>) attributes {dimension_semantics = [#tpu.dimension_semantics<parallel>], iteration_bounds = array<i64: 3>, scalar_prefetch = 0 : i64, scratch_operands = 0 : i64, tpu.core_type = #tpu.core_type<tc>, window_params = [{transform_indices = @transform_0, window_bounds = array<i64: 8, 32>}, {pipeline_mode = #tpu.pipeline_mode<synchronous>, transform_indices = @transform_1, window_bounds = array<i64: 32, 128>}, {pipeline_mode = #tpu.pipeline_mode<synchronous>, transform_indices = @transform_2, window_bounds = array<i64: 1, 128>}, {pipeline_mode = #tpu.pipeline_mode<synchronous>, transform_indices = @transform_3, window_bounds = array<i64: 128, 128>}, {pipeline_mode = #tpu.pipeline_mode<synchronous>, transform_indices = @transform_4, window_bounds = array<i64: 1, 128>}, {pipeline_mode = #tpu.pipeline_mode<synchronous>, transform_indices = @transform_5, window_bounds = array<i64: 128, 128>}, {pipeline_mode = #tpu.pipeline_mode<synchronous>, transform_indices = @transform_6, window_bounds = array<i64: 1, 128>}, {pipeline_mode = #tpu.pipeline_mode<synchronous>, transform_indices = @transform_7, window_bounds = array<i64: 128, 4>}, {pipeline_mode = #tpu.pipeline_mode<synchronous>, transform_indices = @transform_8, window_bounds = array<i64: 1, 4>}, {transform_indices = @transform_9, window_bounds = array<i64: 8, 4>}]} {
    %c0 = arith.constant 0 : index
    %c0_0 = arith.constant 0 : index
    %0 = vector.load %arg1[%c0, %c0_0] : memref<8x32xf32, #tpu.memory_space<vmem>>, vector<8x32xf32>
    %1 = arith.truncf %0 : vector<8x32xf32> to vector<8x32xbf16>
    %c0_1 = arith.constant 0 : index
    %c0_2 = arith.constant 0 : index
    %2 = vector.load %arg2[%c0_1, %c0_2] : memref<32x128xbf16, #tpu.memory_space<vmem>>, vector<32x128xbf16>
    %cst = arith.constant dense<0.000000e+00> : vector<8x128xf32>
    %3 = tpu.matmul %1, %2, %cst {dimension_numbers = #tpu.dot_dimension_numbers<[1], [0], [0], [1], [0, 0, 1, 1], [], []>} : vector<8x32xbf16>, vector<32x128xbf16>, vector<8x128xf32> -> vector<8x128xf32>
    %c0_3 = arith.constant 0 : index
    %c0_4 = arith.constant 0 : index
    %4 = vector.load %arg3[%c0_3, %c0_4] : memref<1x128xf32, #tpu.memory_space<vmem>>, vector<1x128xf32>
    %5 = vector.broadcast %4 : vector<1x128xf32> to vector<8x128xf32>
    %6 = arith.addf %3, %5 : vector<8x128xf32>
    %cst_5 = arith.constant 0.000000e+00 : f32
    %7 = vector.broadcast %cst_5 : f32 to vector<8x128xf32>
    %8 = arith.maximumf %6, %7 : vector<8x128xf32>
    %9 = arith.truncf %8 : vector<8x128xf32> to vector<8x128xbf16>
    %c0_6 = arith.constant 0 : index
    %c0_7 = arith.constant 0 : index
    %10 = vector.load %arg4[%c0_6, %c0_7] : memref<128x128xbf16, #tpu.memory_space<vmem>>, vector<128x128xbf16>
    %cst_8 = arith.constant dense<0.000000e+00> : vector<8x128xf32>
    %11 = tpu.matmul %9, %10, %cst_8 {dimension_numbers = #tpu.dot_dimension_numbers<[1], [0], [0], [1], [0, 0, 1, 1], [], []>} : vector<8x128xbf16>, vector<128x128xbf16>, vector<8x128xf32> -> vector<8x128xf32>
    %c0_9 = arith.constant 0 : index
    %c0_10 = arith.constant 0 : index
    %12 = vector.load %arg5[%c0_9, %c0_10] : memref<1x128xf32, #tpu.memory_space<vmem>>, vector<1x128xf32>
    %13 = vector.broadcast %12 : vector<1x128xf32> to vector<8x128xf32>
    %14 = arith.addf %11, %13 : vector<8x128xf32>
    %cst_11 = arith.constant 0.000000e+00 : f32
    %15 = vector.broadcast %cst_11 : f32 to vector<8x128xf32>
    %16 = arith.maximumf %14, %15 : vector<8x128xf32>
    %17 = arith.truncf %16 : vector<8x128xf32> to vector<8x128xbf16>
    %c0_12 = arith.constant 0 : index
    %c0_13 = arith.constant 0 : index
    %18 = vector.load %arg6[%c0_12, %c0_13] : memref<128x128xbf16, #tpu.memory_space<vmem>>, vector<128x128xbf16>
    %cst_14 = arith.constant dense<0.000000e+00> : vector<8x128xf32>
    %19 = tpu.matmul %17, %18, %cst_14 {dimension_numbers = #tpu.dot_dimension_numbers<[1], [0], [0], [1], [0, 0, 1, 1], [], []>} : vector<8x128xbf16>, vector<128x128xbf16>, vector<8x128xf32> -> vector<8x128xf32>
    %c0_15 = arith.constant 0 : index
    %c0_16 = arith.constant 0 : index
    %20 = vector.load %arg7[%c0_15, %c0_16] : memref<1x128xf32, #tpu.memory_space<vmem>>, vector<1x128xf32>
    %21 = vector.broadcast %20 : vector<1x128xf32> to vector<8x128xf32>
    %22 = arith.addf %19, %21 : vector<8x128xf32>
    %cst_17 = arith.constant 0.000000e+00 : f32
    %23 = vector.broadcast %cst_17 : f32 to vector<8x128xf32>
    %24 = arith.maximumf %22, %23 : vector<8x128xf32>
    %25 = arith.truncf %24 : vector<8x128xf32> to vector<8x128xbf16>
    %c0_18 = arith.constant 0 : index
    %c0_19 = arith.constant 0 : index
    %26 = vector.load %arg8[%c0_18, %c0_19] : memref<128x4xbf16, #tpu.memory_space<vmem>>, vector<128x4xbf16>
    %cst_20 = arith.constant dense<0.000000e+00> : vector<8x4xf32>
    %27 = tpu.matmul %25, %26, %cst_20 {dimension_numbers = #tpu.dot_dimension_numbers<[1], [0], [0], [1], [0, 0, 1, 1], [], []>} : vector<8x128xbf16>, vector<128x4xbf16>, vector<8x4xf32> -> vector<8x4xf32>
    %c0_21 = arith.constant 0 : index
    %c0_22 = arith.constant 0 : index
    %28 = vector.load %arg9[%c0_21, %c0_22] : memref<1x4xf32, #tpu.memory_space<vmem>>, vector<1x4xf32>
    %29 = vector.broadcast %28 : vector<1x4xf32> to vector<8x4xf32>
    %30 = arith.addf %27, %29 : vector<8x4xf32>
    %31 = math.tanh %30 : vector<8x4xf32>
    %c0_23 = arith.constant 0 : index
    %c0_24 = arith.constant 0 : index
    %32 = vector.load %arg10[%c0_23, %c0_24] : memref<8x4xf32, #tpu.memory_space<vmem>>, vector<8x4xf32>
    tpu.vector_store %arg10[%c0_23, %c0_24], %31 {strides = array<i32>} : memref<8x4xf32, #tpu.memory_space<vmem>>, vector<8x4xf32>,
    return
  }
  func.func @transform_0(%arg0: i32) -> (i32, i32) {
    %c0_i32 = arith.constant 0 : i32
    %c0_i32_0 = arith.constant 0 : i32
    return %arg0, %c0_i32 : i32, i32
  }
  func.func @transform_1(%arg0: i32) -> (i32, i32) {
    %c0_i32 = arith.constant 0 : i32
    %c0_i32_0 = arith.constant 0 : i32
    %c0_i32_1 = arith.constant 0 : i32
    return %c0_i32, %c0_i32_0 : i32, i32
  }
  func.func @transform_2(%arg0: i32) -> (i32, i32) {
    %c0_i32 = arith.constant 0 : i32
    %c0_i32_0 = arith.constant 0 : i32
    %c0_i32_1 = arith.constant 0 : i32
    return %c0_i32, %c0_i32_0 : i32, i32
  }
  func.func @transform_3(%arg0: i32) -> (i32, i32) {
    %c0_i32 = arith.constant 0 : i32
    %c0_i32_0 = arith.constant 0 : i32
    %c0_i32_1 = arith.constant 0 : i32
    return %c0_i32, %c0_i32_0 : i32, i32
  }
  func.func @transform_4(%arg0: i32) -> (i32, i32) {
    %c0_i32 = arith.constant 0 : i32
    %c0_i32_0 = arith.constant 0 : i32
    %c0_i32_1 = arith.constant 0 : i32
    return %c0_i32, %c0_i32_0 : i32, i32
  }
  func.func @transform_5(%arg0: i32) -> (i32, i32) {
    %c0_i32 = arith.constant 0 : i32
    %c0_i32_0 = arith.constant 0 : i32
    %c0_i32_1 = arith.constant 0 : i32
    return %c0_i32, %c0_i32_0 : i32, i32
  }
  func.func @transform_6(%arg0: i32) -> (i32, i32) {
    %c0_i32 = arith.constant 0 : i32
    %c0_i32_0 = arith.constant 0 : i32
    %c0_i32_1 = arith.constant 0 : i32
    return %c0_i32, %c0_i32_0 : i32, i32
  }
  func.func @transform_7(%arg0: i32) -> (i32, i32) {
    %c0_i32 = arith.constant 0 : i32
    %c0_i32_0 = arith.constant 0 : i32
    %c0_i32_1 = arith.constant 0 : i32
    return %c0_i32, %c0_i32_0 : i32, i32
  }
  func.func @transform_8(%arg0: i32) -> (i32, i32) {
    %c0_i32 = arith.constant 0 : i32
    %c0_i32_0 = arith.constant 0 : i32
    %c0_i32_1 = arith.constant 0 : i32
    return %c0_i32, %c0_i32_0 : i32, i32
  }
  func.func @transform_9(%arg0: i32) -> (i32, i32) {
    %c0_i32 = arith.constant 0 : i32
    %c0_i32_0 = arith.constant 0 : i32
    return %arg0, %c0_i32 : i32, i32
  }
}

</mosaic_0001>

<bundles_post_ra>
// kernel: actor_forward.1
= control target key start
LH: loop header
LB: loop body
LE: loop exit
PB: predicated region body
PF: predicated region fallthrough
CT: control target
= control target key end

     0   :  { %s1029_s30 = smov 0   ;;  %s1177_s0 = inlined_call_operand.vmem [shape: f32[20,32], index: 0, kind: input, shape index: {}]   ;;  %s1178_s1 = inlined_call_operand.vmem [shape: bf16[32,128], index: 1, kind: input, shape index: {}]   ;;  %s1179_s2 = inlined_call_operand.vmem [shape: f32[1,128], index: 2, kind: input, shape index: {}]   ;;  %s1180_s3 = inlined_call_operand.vmem [shape: bf16[128,128], index: 3, kind: input, shape index: {}]   ;;  %s1181_s4 = inlined_call_operand.vmem [shape: f32[1,128], index: 4, kind: input, shape index: {}]   ;;  %s1182_s5 = inlined_call_operand.vmem [shape: bf16[128,128], index: 5, kind: input, shape index: {}]   ;;  %s1183_s6 = inlined_call_operand.vmem [shape: f32[1,128], index: 6, kind: input, shape index: {}]   ;;  %s1184_s7 = inlined_call_operand.vmem [shape: bf16[128,4], index: 7, kind: input, shape index: {}]   ;;  %s1185_s8 = inlined_call_operand.vmem [shape: f32[1,4], index: 8, kind: input, shape index: {}]   ;;  %s1186_s9 = inlined_call_operand.vmem [shape: f32[20,4], index: 9, kind: output, shape index: {}]  }
   0x1 LB: > { %s793_s10 = sadd.s32 4294967295, %s975_s30   ;;  %p797_p0 = scmp.ge.s32.totalorder %s975_s30, 1  ;;  %s975_s30 = sphi %s1029_s30, %s19_s30  }
   0x2   : > { %p286_p1 = scmp.lt.s32.totalorder %s975_s30, 4 }
   0x4   : > { %p287_p2 = pnand %p797_p0, %p286_p1 }
   0x5   : > { %p320_p3 = scmp.lt.s32.totalorder (!%p287_p2), %s793_s10, 2 }
   0x6   : > { %290 = sbr.rel (%p287_p2) target bundleno = 827 (0x33b), region = 56 }
   0xb   : > { %v941_v0 = vld [vmem:[%s1178_s1 + $0x8] sm:$0xff]   ;;  %v977_v1 = vmov 0.0   ;;  %v942_v2 = vld [vmem:[%s1178_s1] sm:$0xff]   ;;  %vm978_vm0 = vmmov 0   ;;  %v943_v3 = vld [vmem:[%s1180_s3 + $0x38] sm:$0xff]   ;;  %s1188_s10 = smov (!%p320_p3, %s793_s10), 2 }
   0xc   : > { %863 = vmatprep.subr.bf16.mxu0 %v977_v1  ;;  %871 = vmatprep.subr.bf16.mxu1 %v977_v1  ;;  %v944_v4 = vld [vmem:[%s1180_s3 + $0x30] sm:$0xff]   ;;  %s798_s19 = sshll.u32 %s1188_s10, 3  ;;  %vm354_vm1 = vcmask 261120   ;;  %v945_v6 = vld [vmem:[%s1180_s3 + $0x28] sm:$0xff]   ;;  %v946_v8 = vld [vmem:[%s1180_s3 + $0x20] sm:$0xff]   ;;  %vm738_vm2 = vcmask 31744  }
   0xd   : > { %864 = vmatpush3.bf16.msra.mxu0 %v941_v0  ;;  %867 = vmatprep.mubr.msk.bf16.mxu0 %vm978_vm0, %v977_v1  ;;  %s323_s22 = scalar_lea.vmem %s1177_s0, %s798_s19  ;;  %v947_v9 = vld [vmem:[%s1180_s3 + $0x18] sm:$0xff]   ;;  %v948_v10 = vld [vmem:[%s1180_s3 + $0x10] sm:$0xff]   ;;  %v949_v11 = vld [vmem:[%s1180_s3 + $0x8] sm:$0xff]   ;;  %s327_s23 = scalar_lea.vmem %s1186_s9, %s798_s19 }
   0xe   : > { %865 = vmatprep.subr.bf16.mxu0 %v977_v1  ;;  %887 = vmatprep.mubr.msk.bf16.mxu1 %vm978_vm0, %v977_v1  ;;  %v329_v5 = vld [vmem:[%s323_s22] sm:$0xff]  ;;  %v951_v13 = vld [vmem:[%s1182_s5 + $0x38] sm:$0xff]   ;;  %v952_v14 = vld [vmem:[%s1182_s5 + $0x30] sm:$0xff]  }
   0xf   : > { %872 = vmatpush3.bf16.msra.mxu1 %v943_v3  ;;  %v330_v7 = vpack.c.bf16 %v329_v5, %v329_v5  ;;  %v950_v12 = vld [vmem:[%s1180_s3] sm:$0xff]   ;;  %v953_v15 = vld [vmem:[%s1182_s5 + $0x28] sm:$0xff]   ;;  %v955_v17 = vld [vmem:[%s1182_s5 + $0x18] sm:$0xff]  }
  0x10   : > { %873 = vmatprep.subr.bf16.mxu1 %v977_v1  ;;  %v954_v16 = vld [vmem:[%s1182_s5 + $0x20] sm:$0xff]   ;;  %v956_v18 = vld [vmem:[%s1182_s5 + $0x10] sm:$0xff]   ;;  %v957_v27 = vld [vmem:[%s1182_s5 + $0x8] sm:$0xff]  }
  0x11   : > { %866 = vmatpush3.bf16.msra.mxu0 %v942_v2  ;;  %v800_v19 = vld [vmem:[%s1179_s2] ss:$0 sm:$0xff]  ;;  %v959_v29 = vld [vmem:[%s1184_s7 + $0x38] sm:$0xff]   ;;  %v960_v30 = vld [vmem:[%s1184_s7 + $0x30] sm:$0xff]  }
  0x12   : > { %891 = vmatprep.subr.bf16.mxu0 %v977_v1  ;;  %v958_v28 = vld [vmem:[%s1182_s5] sm:$0xff]   ;;  %v961_v31 = vld [vmem:[%s1184_s7 + $0x28] sm:$0xff]   ;;  %v963_v33 = vld [vmem:[%s1184_s7 + $0x18] sm:$0xff]  }
  0x13   : > { %874 = vmatpush3.bf16.msra.mxu1 %v944_v4  ;;  %v962_v32 = vld [vmem:[%s1184_s7 + $0x20] sm:$0xff]   ;;  %v964_v34 = vld [vmem:[%s1184_s7 + $0x10] sm:$0xff]   ;;  %v965_v43 = vld [vmem:[%s1184_s7 + $0x8] sm:$0xff]  }
  0x14   : > { %875 = vmatprep.subr.bf16.mxu1 %v977_v1  ;;  %868 = vmatmul.mubr.msk.bf16.vlgmr.msra.gmra.mxu0 %vm354_vm1, %v330_v7  ;;  %v804_v35 = vld [vmem:[%s1181_s4] ss:$0 sm:$0xff] }
  0x15   : > { %907 = vmatprep.mubr.msk.bf16.mxu0 %vm978_vm0, %v977_v1  ;;  %892 = vmatpush3.bf16.msra.mxu0 %v951_v13  ;;  %v966_v44 = vld [vmem:[%s1184_s7] sm:$0xff]  }
  0x16   : > { %893 = vmatprep.subr.bf16.mxu0 %v977_v1  ;;  %v813_v45 = vld [vmem:[%s1183_s6] ss:$0 sm:$0xff] }
  0x17   : > { %876 = vmatpush3.bf16.msra.mxu1 %v945_v6  ;;  %v822_v53 = vld [vmem:[%s1185_s8] ss:$0 sm:$0xff] }
  0x18   : > { %877 = vmatprep.subr.bf16.mxu1 %v977_v1 }
  0x19   : > { %894 = vmatpush3.bf16.msra.mxu0 %v952_v14 }
  0x1a   : > { %895 = vmatprep.subr.bf16.mxu0 %v977_v1 }
  0x1b   : > { %878 = vmatpush3.bf16.msra.mxu1 %v946_v8 }
  0x1c   : > { %879 = vmatprep.subr.bf16.mxu1 %v977_v1 }
  0x1d   : > { %896 = vmatpush3.bf16.msra.mxu0 %v953_v15 }
  0x1e   : > { %897 = vmatprep.subr.bf16.mxu0 %v977_v1 }
  0x1f   : > { %880 = vmatpush3.bf16.msra.mxu1 %v947_v9 }
  0x20   : > { %881 = vmatprep.subr.bf16.mxu1 %v977_v1 }
  0x21   : > { %898 = vmatpush3.bf16.msra.mxu0 %v954_v16 }
  0x22   : > { %899 = vmatprep.subr.bf16.mxu0 %v977_v1 }
  0x23   : > { %882 = vmatpush3.bf16.msra.mxu1 %v948_v10 }
  0x24   : > { %883 = vmatprep.subr.bf16.mxu1 %v977_v1 }
  0x25   : > { %900 = vmatpush3.bf16.msra.mxu0 %v955_v17 }
  0x26   : > { %901 = vmatprep.subr.bf16.mxu0 %v977_v1 }
  0x27   : > { %884 = vmatpush3.bf16.msra.mxu1 %v949_v11 }
  0x28   : > { %885 = vmatprep.subr.bf16.mxu1 %v977_v1 }
  0x29   : > { %902 = vmatpush3.bf16.msra.mxu0 %v956_v18 }
  0x2a   : > { %903 = vmatprep.subr.bf16.mxu0 %v977_v1 }
  0x2b   : > { %886 = vmatpush3.bf16.msra.mxu1 %v950_v12 }
  0x2c   : > { %911 = vmatprep.subr.bf16.mxu1 %v977_v1 }
  0x2d   : > { %904 = vmatpush3.bf16.msra.mxu0 %v957_v27 }
  0x2e   : > { %905 = vmatprep.subr.bf16.mxu0 %v977_v1 }
  0x31   : > { %906 = vmatpush3.bf16.msra.mxu0 %v958_v28 }
  0xd4   : > { %v392_v20 = vpop.f32.mrf.mxu0 }
  0xd5   : > { %v393_v21 = vadd.f32 %v800_v19, %v392_v20 }
  0xd6   : > { %v869_v22 = vpop.f32.mrf.mxu0 }
  0xd7   : > { %v398_v23 = vmax.f32 %v393_v21, 0.0 }
  0xd8   : > { %v395_v24 = vpop.f32.mrf.mxu0 }
  0xd9   : > { %v399_v25 = vpack.c.bf16 %v398_v23, %v398_v23 }
  0xda   : > { %v870_v26 = vpop.f32.mrf.mxu0 }
  0xdb   : > { %888 = vmatmul.mubr.bf16.vlgmr.msra.gmra.mxu1 %v399_v25 }
  0xdc   : > { %927 = vmatprep.mubr.msk.bf16.mxu1 %vm978_vm0, %v977_v1  ;;  %912 = vmatpush3.bf16.msra.mxu1 %v959_v29 }
  0xdd   : > { %913 = vmatprep.subr.bf16.mxu1 %v977_v1 }
  0xe0   : > { %914 = vmatpush3.bf16.msra.mxu1 %v960_v30 }
  0xe1   : > { %915 = vmatprep.subr.bf16.mxu1 %v977_v1 }
  0xe4   : > { %916 = vmatpush3.bf16.msra.mxu1 %v961_v31 }
  0xe5   : > { %917 = vmatprep.subr.bf16.mxu1 %v977_v1 }
  0xe8   : > { %918 = vmatpush3.bf16.msra.mxu1 %v962_v32 }
  0xe9   : > { %919 = vmatprep.subr.bf16.mxu1 %v977_v1 }
  0xec   : > { %920 = vmatpush3.bf16.msra.mxu1 %v963_v33 }
  0xed   : > { %921 = vmatprep.subr.bf16.mxu1 %v977_v1 }
  0xf0   : > { %922 = vmatpush3.bf16.msra.mxu1 %v964_v34 }
  0xf1   : > { %923 = vmatprep.subr.bf16.mxu1 %v977_v1 }
  0xf4   : > { %924 = vmatpush3.bf16.msra.mxu1 %v965_v43 }
  0xf5   : > { %925 = vmatprep.subr.bf16.mxu1 %v977_v1 }
  0xf8   : > { %926 = vmatpush3.bf16.msra.mxu1 %v966_v44 }
 0x19b   : > { %v505_v36 = vpop.f32.mrf.mxu1 }
 0x19c   : > { %v506_v37 = vadd.f32 %v804_v35, %v505_v36 }
 0x19d   : > { %v889_v38 = vpop.f32.mrf.mxu1 }
 0x19e   : > { %v511_v39 = vmax.f32 %v506_v37, 0.0 }
 0x19f   : > { %v508_v40 = vpop.f32.mrf.mxu1 }
 0x1a0   : > { %v512_v41 = vpack.c.bf16 %v511_v39, %v511_v39 }
 0x1a1   : > { %v890_v42 = vpop.f32.mrf.mxu1 }
 0x1a2   : > { %908 = vmatmul.mubr.bf16.vlgmr.msra.gmra.mxu0 %v512_v41 }
 0x262   : > { %v618_v46 = vpop.f32.mrf.mxu0 }
 0x263   : > { %v619_v47 = vadd.f32 %v813_v45, %v618_v46 }
 0x264   : > { %v909_v48 = vpop.f32.mrf.mxu0 }
 0x265   : > { %v624_v49 = vmax.f32 %v619_v47, 0.0 }
 0x266   : > { %v621_v50 = vpop.f32.mrf.mxu0 }
 0x267   : > { %v625_v51 = vpack.c.bf16 %v624_v49, %v624_v49 }
 0x268   : > { %v910_v52 = vpop.f32.mrf.mxu0 }
 0x269   : > { %928 = vmatmul.mubr.bf16.vlgmr.msra.gmra.mxu1 %v625_v51 }
 0x329   : > { %v731_v54 = vpop.f32.mrf.mxu1 }
 0x32a   : > { %v732_v55 = vadd.f32 %v822_v53, %v731_v54 }
 0x32b   : > { %v929_v56 = vpop.f32.mrf.mxu1 }
 0x32c   : > { %967 = vtanh.f32 %v732_v55 }
 0x32d   : > { %v734_v57 = vpop.f32.mrf.mxu1 }
 0x32f   : > { %v930_v58 = vpop.f32.mrf.mxu1 }
 0x339   : > { %v968_v59 = vpop.eup %967 }
 0x33a   : > { %739 = vst.msk [vmem:[%s327_s23] sm:$0xff] %vm738_vm2, %v968_v59 }
 0x33b PF: > { %s19_s30 = sadd.s32 1, %s975_s30  }
 0x33c   : > { %p16_p4 = scmp.ge.s32.totalorder %s19_s30, 5  }
 0x33e   :  { %18 = sbr.rel (!%p16_p4) target bundleno = 1 (0x1), region = 86 }

</bundles_post_ra>
